<compile_context>
chip_gen: v5e
topology: v5e:2x2
jax: 0.10.0
libtpu: 0.0.40
codegen_flags: <defaults>
</compile_context>

<pallas_src>
import jax
import jax.numpy as jnp
import numpy as np
from jax.experimental import pallas as pl
from jax.experimental.pallas import tpu as pltpu

_INV_SQRT2 = np.float32(0.70710678118654752440)


# ----------------------------------------------------------------------------
# Fused (wavelet-folded fc1) + ReLU + fc2 + ReLU + fc3 kernel
# ----------------------------------------------------------------------------
def _fused_waveletnet_kernel(x_ref, w1_ref, b1_ref, w2_ref, b2_ref,
                             w3_ref, b3_ref, o_ref, h1_ref, h2_ref):
    """One (TB, N) batch tile through the whole MLP.

    x_ref : (TB, N)      input rows (wavelet already folded into w1)
    w*_ref: full weight matrices, VMEM-resident across all grid steps
    b*_ref: (1, out_features) biases
    o_ref : (TB, out_dim) final logits
    h1_ref/h2_ref : VMEM scratch for the intermediate activations
    """
    h1 = jnp.dot(x_ref[...], w1_ref[...], preferred_element_type=jnp.float32)
    h1_ref[...] = jnp.maximum(h1 + b1_ref[...], 0.0)

    h2 = jnp.dot(h1_ref[...], w2_ref[...], preferred_element_type=jnp.float32)
    h2_ref[...] = jnp.maximum(h2 + b2_ref[...], 0.0)

    y = jnp.dot(h2_ref[...], w3_ref[...], preferred_element_type=jnp.float32)
    o_ref[...] = (y + b3_ref[...]).astype(o_ref.dtype)


def _fold_haar_into_fc1(w1):
    """W1' = H^T @ W1 for the db1/Haar level-1 analysis matrix H.

    DWT(x) = [cA | cD] with cA[k]=(x[2k]+x[2k+1])/sqrt2, cD[k]=(x[2k]-x[2k+1])/sqrt2,
    so   W1'[2k]   = (W1[k] + W1[half+k]) / sqrt2
         W1'[2k+1] = (W1[k] - W1[half+k]) / sqrt2
    """
    n, m = w1.shape
    half = n // 2
    wa, wd = w1[:half], w1[half:]
    w_even = (wa + wd) * _INV_SQRT2
    w_odd = (wa - wd) * _INV_SQRT2
    return jnp.stack([w_even, w_odd], axis=1).reshape(n, m)


def _pick_batch_tile(batch):
    """Full batch up to 512 rows (always a legal block), multiple of 8 beyond."""
    if batch <= 512:
        return batch
    return 512


def waveletnet_forward(x, params):
    """JAX/Pallas equivalent of WaveletNet.forward (db1 wavelet + 3-layer MLP)."""
    x = x.astype(jnp.float32)
    B, N = x.shape
    assert N % 2 == 0, "db1 level-1 fast path requires an even feature count"

    w1 = params["w1"].astype(jnp.float32)          # (N, H1), expects wavelet-domain input
    w2 = params["w2"].astype(jnp.float32)          # (H1, H2)
    w3 = params["w3"].astype(jnp.float32)          # (H2, OUT)
    assert w1.shape[0] == N

    # Fold the (linear) Haar transform into fc1's weights — one tiny XLA op.
    w1f = _fold_haar_into_fc1(w1)                  # (N, H1)
    h1_dim, h2_dim = w1f.shape[1], w2.shape[1]
    out_dim = w3.shape[1]

    b1 = params["b1"].reshape(1, h1_dim).astype(jnp.float32)
    b2 = params["b2"].reshape(1, h2_dim).astype(jnp.float32)
    b3 = params["b3"].reshape(1, out_dim).astype(jnp.float32)

    tb = _pick_batch_tile(B)
    grid = (pl.cdiv(B, tb),)

    const = lambda i: (0, 0)   # weights/biases: same block every grid step -> DMA'd once
    flops = 2 * B * (N * h1_dim + h1_dim * h2_dim + h2_dim * out_dim)
    weight_bytes = 4 * (N * h1_dim + h1_dim * h2_dim + h2_dim * out_dim
                        + h1_dim + h2_dim + out_dim)

    return pl.pallas_call(
        _fused_waveletnet_kernel,
        out_shape=jax.ShapeDtypeStruct((B, out_dim), jnp.float32),
        grid=grid,
        in_specs=[
            pl.BlockSpec((tb, N), lambda i: (i, 0)),       # x batch tile
            pl.BlockSpec((N, h1_dim), const),              # W1'  (wavelet folded)
            pl.BlockSpec((1, h1_dim), const),              # b1
            pl.BlockSpec((h1_dim, h2_dim), const),         # W2
            pl.BlockSpec((1, h2_dim), const),              # b2
            pl.BlockSpec((h2_dim, out_dim), const),        # W3
            pl.BlockSpec((1, out_dim), const),             # b3
        ],
        out_specs=pl.BlockSpec((tb, out_dim), lambda i: (i, 0)),
        scratch_shapes=[
            pltpu.VMEM((tb, h1_dim), jnp.float32),         # h1 = relu(fc1)
            pltpu.VMEM((tb, h2_dim), jnp.float32),         # h2 = relu(fc2)
        ],
        compiler_params=pltpu.CompilerParams(
            dimension_semantics=("parallel",)),
        cost_estimate=pl.CostEstimate(
            flops=flops,
            transcendentals=0,
            bytes_accessed=4 * (B * N + B * out_dim) + weight_bytes),
    )(x, w1f, b1, w2, b2, w3, b3)


# ----------------------------------------------------------------------------
# References & test harness
# ----------------------------------------------------------------------------
def _reference_haar_np(x_np):
    """Pure-numpy reference matching pywt.wavedec(..., 'db1', level=1), even N."""
    xe = x_np[:, 0::2]
    xo = x_np[:, 1::2]
    cA = (xe + xo) * _INV_SQRT2
    cD = (xe - xo) * _INV_SQRT2
    return np.concatenate([cA, cD], axis=1).astype(np.float32)


def _reference_forward_np(x_np, params):
    h = _reference_haar_np(x_np)
    h = np.maximum(h @ np.asarray(params["w1"]) + np.asarray(params["b1"]), 0.0)
    h = np.maximum(h @ np.asarray(params["w2"]) + np.asarray(params["b2"]), 0.0)
    return h @ np.asarray(params["w3"]) + np.asarray(params["b3"])


def _init_linear(kw, kb, fan_in, fan_out):
    bound = float(1.0 / np.sqrt(fan_in))
    w = jax.random.uniform(kw, (fan_in, fan_out), jnp.float32, -bound, bound)
    b = jax.random.uniform(kb, (fan_out,), jnp.float32, -bound, bound)
    return w, b


def _make_params(key, input_dim, output_dim):
    k1, kb1, k2, kb2, k3, kb3 = jax.random.split(key, 6)
    w1, b1 = _init_linear(k1, kb1, input_dim, 256)
    w2, b2 = _init_linear(k2, kb2, 256, 512)
    w3, b3 = _init_linear(k3, kb3, 512, output_dim)
    return {"w1": w1, "b1": b1, "w2": w2, "b2": b2, "w3": w3, "b3": b3}


if __name__ == "__main__":
    key = jax.random.PRNGKey(0)
    kx, kp, kx2, kp2 = jax.random.split(key, 4)

    # Small case, matching the module's shapes (batch, features) -> (batch, output_dim).
    batch_size, features, output_dim = 4, 16, 128
    x = jax.random.normal(kx, (batch_size, features), dtype=jnp.float32)
    params = _make_params(kp, features, output_dim)

    fwd = jax.jit(waveletnet_forward)
    out = jax.block_until_ready(fwd(x, params))
    ref = _reference_forward_np(np.asarray(x), params)
    np.testing.assert_allclose(np.asarray(out), ref, rtol=2e-4, atol=2e-4)

    # Larger batch: exercises the multi-step batch grid (tb=512, 2 grid steps).
    batch_size2, features2 = 1024, 64
    x2 = jax.random.normal(kx2, (batch_size2, features2), dtype=jnp.float32)
    params2 = _make_params(kp2, features2, output_dim)
    out2 = jax.block_until_ready(jax.jit(waveletnet_forward)(x2, params2))
    ref2 = _reference_forward_np(np.asarray(x2), params2)
    np.testing.assert_allclose(np.asarray(out2), ref2, rtol=2e-4, atol=2e-4)

    print("KERNEL_OK")
</pallas_src>

<mosaic_0001>
module attributes {stable_mosaic.version = 11 : i64} {
  func.func @_fused_waveletnet_kernel(%arg0: i32, %arg1: memref<4x16xf32, #tpu.memory_space<vmem>>, %arg2: memref<16x256xf32, #tpu.memory_space<vmem>>, %arg3: memref<1x256xf32, #tpu.memory_space<vmem>>, %arg4: memref<256x512xf32, #tpu.memory_space<vmem>>, %arg5: memref<1x512xf32, #tpu.memory_space<vmem>>, %arg6: memref<512x128xf32, #tpu.memory_space<vmem>>, %arg7: memref<1x128xf32, #tpu.memory_space<vmem>>, %arg8: memref<4x128xf32, #tpu.memory_space<vmem>>, %arg9: memref<4x256xf32, #tpu.memory_space<vmem>>, %arg10: memref<4x512xf32, #tpu.memory_space<vmem>>) attributes {dimension_semantics = [#tpu.dimension_semantics<parallel>], iteration_bounds = array<i64: 1>, scalar_prefetch = 0 : i64, scratch_operands = 2 : i64, tpu.core_type = #tpu.core_type<tc>, window_params = [{transform_indices = @transform_0, window_bounds = array<i64: 4, 16>}, {pipeline_mode = #tpu.pipeline_mode<synchronous>, transform_indices = @transform_1, window_bounds = array<i64: 16, 256>}, {pipeline_mode = #tpu.pipeline_mode<synchronous>, transform_indices = @transform_2, window_bounds = array<i64: 1, 256>}, {pipeline_mode = #tpu.pipeline_mode<synchronous>, transform_indices = @transform_3, window_bounds = array<i64: 256, 512>}, {pipeline_mode = #tpu.pipeline_mode<synchronous>, transform_indices = @transform_4, window_bounds = array<i64: 1, 512>}, {pipeline_mode = #tpu.pipeline_mode<synchronous>, transform_indices = @transform_5, window_bounds = array<i64: 512, 128>}, {pipeline_mode = #tpu.pipeline_mode<synchronous>, transform_indices = @transform_6, window_bounds = array<i64: 1, 128>}, {transform_indices = @transform_7, window_bounds = array<i64: 4, 128>}]} {
    %c0 = arith.constant 0 : index
    %c0_0 = arith.constant 0 : index
    %0 = vector.load %arg1[%c0, %c0_0] : memref<4x16xf32, #tpu.memory_space<vmem>>, vector<4x16xf32>
    %c0_1 = arith.constant 0 : index
    %c0_2 = arith.constant 0 : index
    %1 = vector.load %arg2[%c0_1, %c0_2] : memref<16x256xf32, #tpu.memory_space<vmem>>, vector<16x256xf32>
    %cst = arith.constant dense<0.000000e+00> : vector<4x256xf32>
    %2 = tpu.matmul %0, %1, %cst {dimension_numbers = #tpu.dot_dimension_numbers<[1], [0], [0], [1], [0, 0, 1, 1], [], []>} : vector<4x16xf32>, vector<16x256xf32>, vector<4x256xf32> -> vector<4x256xf32>
    %c0_3 = arith.constant 0 : index
    %c0_4 = arith.constant 0 : index
    %3 = vector.load %arg3[%c0_3, %c0_4] : memref<1x256xf32, #tpu.memory_space<vmem>>, vector<1x256xf32>
    %4 = vector.broadcast %3 : vector<1x256xf32> to vector<4x256xf32>
    %5 = arith.addf %2, %4 : vector<4x256xf32>
    %cst_5 = arith.constant 0.000000e+00 : f32
    %6 = vector.broadcast %cst_5 : f32 to vector<4x256xf32>
    %7 = arith.maximumf %5, %6 : vector<4x256xf32>
    %c0_6 = arith.constant 0 : index
    %c0_7 = arith.constant 0 : index
    %8 = vector.load %arg9[%c0_6, %c0_7] : memref<4x256xf32, #tpu.memory_space<vmem>>, vector<4x256xf32>
    tpu.vector_store %arg9[%c0_6, %c0_7], %7 {strides = array<i32>} : memref<4x256xf32, #tpu.memory_space<vmem>>, vector<4x256xf32>,
    %c0_8 = arith.constant 0 : index
    %c0_9 = arith.constant 0 : index
    %9 = vector.load %arg9[%c0_8, %c0_9] : memref<4x256xf32, #tpu.memory_space<vmem>>, vector<4x256xf32>
    %c0_10 = arith.constant 0 : index
    %c0_11 = arith.constant 0 : index
    %10 = vector.load %arg4[%c0_10, %c0_11] : memref<256x512xf32, #tpu.memory_space<vmem>>, vector<256x512xf32>
    %cst_12 = arith.constant dense<0.000000e+00> : vector<4x512xf32>
    %11 = tpu.matmul %9, %10, %cst_12 {dimension_numbers = #tpu.dot_dimension_numbers<[1], [0], [0], [1], [0, 0, 1, 1], [], []>} : vector<4x256xf32>, vector<256x512xf32>, vector<4x512xf32> -> vector<4x512xf32>
    %c0_13 = arith.constant 0 : index
    %c0_14 = arith.constant 0 : index
    %12 = vector.load %arg5[%c0_13, %c0_14] : memref<1x512xf32, #tpu.memory_space<vmem>>, vector<1x512xf32>
    %13 = vector.broadcast %12 : vector<1x512xf32> to vector<4x512xf32>
    %14 = arith.addf %11, %13 : vector<4x512xf32>
    %cst_15 = arith.constant 0.000000e+00 : f32
    %15 = vector.broadcast %cst_15 : f32 to vector<4x512xf32>
    %16 = arith.maximumf %14, %15 : vector<4x512xf32>
    %c0_16 = arith.constant 0 : index
    %c0_17 = arith.constant 0 : index
    %17 = vector.load %arg10[%c0_16, %c0_17] : memref<4x512xf32, #tpu.memory_space<vmem>>, vector<4x512xf32>
    tpu.vector_store %arg10[%c0_16, %c0_17], %16 {strides = array<i32>} : memref<4x512xf32, #tpu.memory_space<vmem>>, vector<4x512xf32>,
    %c0_18 = arith.constant 0 : index
    %c0_19 = arith.constant 0 : index
    %18 = vector.load %arg10[%c0_18, %c0_19] : memref<4x512xf32, #tpu.memory_space<vmem>>, vector<4x512xf32>
    %c0_20 = arith.constant 0 : index
    %c0_21 = arith.constant 0 : index
    %19 = vector.load %arg6[%c0_20, %c0_21] : memref<512x128xf32, #tpu.memory_space<vmem>>, vector<512x128xf32>
    %cst_22 = arith.constant dense<0.000000e+00> : vector<4x128xf32>
    %20 = tpu.matmul %18, %19, %cst_22 {dimension_numbers = #tpu.dot_dimension_numbers<[1], [0], [0], [1], [0, 0, 1, 1], [], []>} : vector<4x512xf32>, vector<512x128xf32>, vector<4x128xf32> -> vector<4x128xf32>
    %c0_23 = arith.constant 0 : index
    %c0_24 = arith.constant 0 : index
    %21 = vector.load %arg7[%c0_23, %c0_24] : memref<1x128xf32, #tpu.memory_space<vmem>>, vector<1x128xf32>
    %22 = vector.broadcast %21 : vector<1x128xf32> to vector<4x128xf32>
    %23 = arith.addf %20, %22 : vector<4x128xf32>
    %c0_25 = arith.constant 0 : index
    %c0_26 = arith.constant 0 : index
    %24 = vector.load %arg8[%c0_25, %c0_26] : memref<4x128xf32, #tpu.memory_space<vmem>>, vector<4x128xf32>
    tpu.vector_store %arg8[%c0_25, %c0_26], %23 {strides = array<i32>} : memref<4x128xf32, #tpu.memory_space<vmem>>, vector<4x128xf32>,
    return
  }
  func.func @transform_0(%arg0: i32) -> (i32, i32) {
    %c0_i32 = arith.constant 0 : i32
    %c0_i32_0 = arith.constant 0 : i32
    return %arg0, %c0_i32 : i32, i32
  }
  func.func @transform_1(%arg0: i32) -> (i32, i32) {
    %c0_i32 = arith.constant 0 : i32
    %c0_i32_0 = arith.constant 0 : i32
    %c0_i32_1 = arith.constant 0 : i32
    return %c0_i32, %c0_i32_0 : i32, i32
  }
  func.func @transform_2(%arg0: i32) -> (i32, i32) {
    %c0_i32 = arith.constant 0 : i32
    %c0_i32_0 = arith.constant 0 : i32
    %c0_i32_1 = arith.constant 0 : i32
    return %c0_i32, %c0_i32_0 : i32, i32
  }
  func.func @transform_3(%arg0: i32) -> (i32, i32) {
    %c0_i32 = arith.constant 0 : i32
    %c0_i32_0 = arith.constant 0 : i32
    %c0_i32_1 = arith.constant 0 : i32
    return %c0_i32, %c0_i32_0 : i32, i32
  }
  func.func @transform_4(%arg0: i32) -> (i32, i32) {
    %c0_i32 = arith.constant 0 : i32
    %c0_i32_0 = arith.constant 0 : i32
    %c0_i32_1 = arith.constant 0 : i32
    return %c0_i32, %c0_i32_0 : i32, i32
  }
  func.func @transform_5(%arg0: i32) -> (i32, i32) {
    %c0_i32 = arith.constant 0 : i32
    %c0_i32_0 = arith.constant 0 : i32
    %c0_i32_1 = arith.constant 0 : i32
    return %c0_i32, %c0_i32_0 : i32, i32
  }
  func.func @transform_6(%arg0: i32) -> (i32, i32) {
    %c0_i32 = arith.constant 0 : i32
    %c0_i32_0 = arith.constant 0 : i32
    %c0_i32_1 = arith.constant 0 : i32
    return %c0_i32, %c0_i32_0 : i32, i32
  }
  func.func @transform_7(%arg0: i32) -> (i32, i32) {
    %c0_i32 = arith.constant 0 : i32
    %c0_i32_0 = arith.constant 0 : i32
    return %arg0, %c0_i32 : i32, i32
  }
}

</mosaic_0001>

<bundles_post_ra>
// kernel: waveletnet_forward.1
= control target key start
LH: loop header
LB: loop body
LE: loop exit
PB: predicated region body
PF: predicated region fallthrough
CT: control target
= control target key end

     0   :  { %12 = vsyncpa [#allocation5], 0  ;;  %s797_s0 = inlined_call_operand.vmem [shape: f32[4,16], index: 0, kind: input, shape index: {}]   ;;  %s798_s1 = inlined_call_operand.vmem [shape: f32[16,256], index: 1, kind: input, shape index: {}]   ;;  %s799_s2 = inlined_call_operand.vmem [shape: f32[1,256], index: 2, kind: input, shape index: {}]   ;;  %s800_s3 = inlined_call_operand.hbm [shape: f32[256,512], index: 3, kind: input, shape index: {}]   ;;  %s801_s4 = inlined_call_operand.vmem [shape: f32[1,512], index: 4, kind: input, shape index: {}]   ;;  %s802_s5 = inlined_call_operand.hbm [shape: f32[512,128], index: 5, kind: input, shape index: {}]   ;;  %s803_s6 = inlined_call_operand.vmem [shape: f32[1,128], index: 6, kind: input, shape index: {}]   ;;  %s804_s7 = inlined_call_operand.hbm [shape: f32[4,128], index: 7, kind: output, shape index: {}]  }
   0x1   :  { %13 = vsyncpa [#allocation8], 0 }
   0x2   :  { %14 = vsyncpa [#allocation6], 0  ;;  %s25_s26 = sshll.u32 %s800_s3, 4  ;;  %s714_s27 = smov [#allocation4]   ;;  %s26_s26 = int_to_ptr.hbm [resolvable:$true] %s25_s26 }
   0x3   :  { %s27_s28 = sshll.u32 %s714_s27, 4  ;;  %s40_s8 = sshll.u32 %s802_s5, 4  ;;  %s28_s28 = int_to_ptr.vmem [resolvable:$true] %s27_s28  ;;  %s41_s8 = int_to_ptr.hbm [resolvable:$true] %s40_s8 }
   0x4   :  { %s715_s9 = smov 512   ;;  %s716_s10 = smov 32  }
   0x5   :  { %33 = dma.hbm_to_vmem [thread:$0]  %s26_s26, 16384, %s28_s28, [#allocation5], %s715_s9, %s715_s9, %s716_s10  }
   0x6   :  { %s717_s11 = smov [#allocation7]   ;;  %s718_s13 = smov 128  }
   0x7   :  { %s42_s12 = sshll.u32 %s717_s11, 4  ;;  %s719_s14 = smov 8   ;;  %s43_s12 = int_to_ptr.vmem [resolvable:$true] %s42_s12 }
   0x8   :  { %48 = dma.hbm_to_vmem [thread:$0]  %s41_s8, 8192, %s43_s12, [#allocation8], %s718_s13, %s718_s13, %s719_s14  }
   0x9   :  { %708 = dma.done.wait [#allocation5], 16384  }
   0xa   :  { %709 = vsyncadd [#allocation5], 4294950912 }
   0xb   :  { %710 = dma.done.wait [#allocation8], 8192  }
   0xc   :  { %711 = vsyncadd [#allocation8], 4294959104  ;;  %v63_v0 = vld [vmem:[%s798_s1 + $0x18] sm:$0xff]  ;;  %v62_v1 = vld [vmem:[%s798_s1 + $0x10] sm:$0xff]  ;;  %vm70_vm0 = vcmask 130048   ;;  %vm119_vm1 = vcmask 1043456  }
   0xd   :  { %v61_v2 = vld [vmem:[%s798_s1 + $0x8] sm:$0xff]  ;;  %108 = vmatpush.msra.mxu1 %v63_v0  ;;  %88 = vmatpush.msra.mxu0 %v62_v1  ;;  %v59_v3 = vld [vmem:[%s797_s0] sm:$0xf]  ;;  %v185_v7 = vld [vmem:[#allocation4 + $0x1e8] sm:$0xff]  ;;  %s720_s25 = smov [#allocation9]   ;;  %s615_s29 = sshll.u32 %s804_s7, 4  ;;  %s616_s29 = int_to_ptr.hbm [resolvable:$true] %s615_s29 }
   0xe   :  { %v60_v4 = vld [vmem:[%s798_s1] sm:$0xff]  ;;  %v184_v5 = vld [vmem:[#allocation4 + $0x1e0] sm:$0xff]  ;;  %v249_v8 = vld [vmem:[#allocation4 + $0x3e8] sm:$0xff]  ;;  %s613_s26 = sshll.u32 %s720_s25, 4  ;;  %s614_s26 = int_to_ptr.vmem [resolvable:$true] %s613_s26 }
   0xf   :  { %268 = vmatpush.msra.mxu2 %v184_v5  ;;  %v248_v6 = vld [vmem:[#allocation4 + $0x3e0] sm:$0xff]  ;;  %109 = vmatpush.msra.mxu1 %v61_v2  ;;  %v181_v11 = vld [vmem:[#allocation4 + $0x1c8] sm:$0xff]  ;;  %v186_v5 = vld [vmem:[#allocation4 + $0x1f0] sm:$0xff] }
  0x10   :  { %89 = vmatpush.msra.mxu0 %v60_v4  ;;  %v180_v9 = vld [vmem:[#allocation4 + $0x1c0] sm:$0xff]  ;;  %627 = vmatmul.msk.f32.vlgmr.msra.gmra.mxu1 %vm70_vm0, %v59_v3  ;;  %v245_v12 = vld [vmem:[#allocation4 + $0x3c8] sm:$0xff] }
  0x11   :  { %626 = vmatmul.msk.f32.vlgmr.msra.gmra.mxu0 %vm70_vm0, %v59_v3  ;;  %v244_v10 = vld [vmem:[#allocation4 + $0x3c0] sm:$0xff]  ;;  %288 = vmatpush.msra.mxu3 %v248_v6  ;;  %v177_v15 = vld [vmem:[#allocation4 + $0x1a8] sm:$0xff]  ;;  %v250_v6 = vld [vmem:[#allocation4 + $0x3f0] sm:$0xff] }
  0x12   :  { %308 = vmatpush.msrb.mxu0 %v185_v7  ;;  %v176_v13 = vld [vmem:[#allocation4 + $0x1a0] sm:$0xff]  ;;  %328 = vmatpush.msrb.mxu1 %v249_v8  ;;  %v241_v16 = vld [vmem:[#allocation4 + $0x3a8] sm:$0xff]  ;;  %v187_v7 = vld [vmem:[#allocation4 + $0x1f8] sm:$0xff] }
  0x13   :  { %269 = vmatpush.msra.mxu2 %v180_v9  ;;  %v240_v14 = vld [vmem:[#allocation4 + $0x3a0] sm:$0xff]  ;;  %289 = vmatpush.msra.mxu3 %v244_v10  ;;  %v173_v19 = vld [vmem:[#allocation4 + $0x188] sm:$0xff]  ;;  %v251_v8 = vld [vmem:[#allocation4 + $0x3f8] sm:$0xff] }
  0x14   :  { %309 = vmatpush.msrb.mxu0 %v181_v11  ;;  %v172_v17 = vld [vmem:[#allocation4 + $0x180] sm:$0xff]  ;;  %329 = vmatpush.msrb.mxu1 %v245_v12  ;;  %v237_v20 = vld [vmem:[#allocation4 + $0x388] sm:$0xff]  ;;  %v182_v9 = vld [vmem:[#allocation4 + $0x1d0] sm:$0xff] }
  0x15   :  { %270 = vmatpush.msra.mxu2 %v176_v13  ;;  %v236_v18 = vld [vmem:[#allocation4 + $0x380] sm:$0xff]  ;;  %290 = vmatpush.msra.mxu3 %v240_v14  ;;  %v169_v23 = vld [vmem:[#allocation4 + $0x168] sm:$0xff]  ;;  %v246_v10 = vld [vmem:[#allocation4 + $0x3d0] sm:$0xff] }
  0x16   :  { %310 = vmatpush.msrb.mxu0 %v177_v15  ;;  %v168_v21 = vld [vmem:[#allocation4 + $0x160] sm:$0xff]  ;;  %330 = vmatpush.msrb.mxu1 %v241_v16  ;;  %v233_v24 = vld [vmem:[#allocation4 + $0x368] sm:$0xff]  ;;  %v183_v11 = vld [vmem:[#allocation4 + $0x1d8] sm:$0xff] }
  0x17   :  { %271 = vmatpush.msra.mxu2 %v172_v17  ;;  %v232_v22 = vld [vmem:[#allocation4 + $0x360] sm:$0xff]  ;;  %291 = vmatpush.msra.mxu3 %v236_v18  ;;  %v165_v27 = vld [vmem:[#allocation4 + $0x148] sm:$0xff]  ;;  %v247_v12 = vld [vmem:[#allocation4 + $0x3d8] sm:$0xff] }
  0x18   :  { %311 = vmatpush.msrb.mxu0 %v173_v19  ;;  %v164_v25 = vld [vmem:[#allocation4 + $0x140] sm:$0xff]  ;;  %331 = vmatpush.msrb.mxu1 %v237_v20  ;;  %v229_v28 = vld [vmem:[#allocation4 + $0x348] sm:$0xff]  ;;  %v178_v13 = vld [vmem:[#allocation4 + $0x1b0] sm:$0xff] }
  0x19   :  { %272 = vmatpush.msra.mxu2 %v168_v21  ;;  %v228_v26 = vld [vmem:[#allocation4 + $0x340] sm:$0xff]  ;;  %292 = vmatpush.msra.mxu3 %v232_v22  ;;  %v161_v31 = vld [vmem:[#allocation4 + $0x128] sm:$0xff]  ;;  %v242_v14 = vld [vmem:[#allocation4 + $0x3b0] sm:$0xff] }
  0x1a   :  { %312 = vmatpush.msrb.mxu0 %v169_v23  ;;  %v160_v29 = vld [vmem:[#allocation4 + $0x120] sm:$0xff]  ;;  %332 = vmatpush.msrb.mxu1 %v233_v24  ;;  %v225_v32 = vld [vmem:[#allocation4 + $0x328] sm:$0xff]  ;;  %v179_v15 = vld [vmem:[#allocation4 + $0x1b8] sm:$0xff] }
  0x1b   :  { %273 = vmatpush.msra.mxu2 %v164_v25  ;;  %v224_v30 = vld [vmem:[#allocation4 + $0x320] sm:$0xff]  ;;  %293 = vmatpush.msra.mxu3 %v228_v26  ;;  %v157_v35 = vld [vmem:[#allocation4 + $0x108] sm:$0xff]  ;;  %v243_v16 = vld [vmem:[#allocation4 + $0x3b8] sm:$0xff] }
  0x1c   :  { %313 = vmatpush.msrb.mxu0 %v165_v27  ;;  %v156_v33 = vld [vmem:[#allocation4 + $0x100] sm:$0xff]  ;;  %333 = vmatpush.msrb.mxu1 %v229_v28  ;;  %v221_v36 = vld [vmem:[#allocation4 + $0x308] sm:$0xff]  ;;  %v174_v17 = vld [vmem:[#allocation4 + $0x190] sm:$0xff] }
  0x1d   :  { %274 = vmatpush.msra.mxu2 %v160_v29  ;;  %v220_v34 = vld [vmem:[#allocation4 + $0x300] sm:$0xff]  ;;  %294 = vmatpush.msra.mxu3 %v224_v30  ;;  %v153_v39 = vld [vmem:[#allocation4 + $0xe8] sm:$0xff]  ;;  %v238_v18 = vld [vmem:[#allocation4 + $0x390] sm:$0xff] }
  0x1e   :  { %314 = vmatpush.msrb.mxu0 %v161_v31  ;;  %v152_v37 = vld [vmem:[#allocation4 + $0xe0] sm:$0xff]  ;;  %334 = vmatpush.msrb.mxu1 %v225_v32  ;;  %v217_v40 = vld [vmem:[#allocation4 + $0x2e8] sm:$0xff]  ;;  %v175_v19 = vld [vmem:[#allocation4 + $0x198] sm:$0xff] }
  0x1f   :  { %275 = vmatpush.msra.mxu2 %v156_v33  ;;  %v216_v38 = vld [vmem:[#allocation4 + $0x2e0] sm:$0xff]  ;;  %295 = vmatpush.msra.mxu3 %v220_v34  ;;  %v149_v43 = vld [vmem:[#allocation4 + $0xc8] sm:$0xff]  ;;  %v239_v20 = vld [vmem:[#allocation4 + $0x398] sm:$0xff] }
  0x20   :  { %315 = vmatpush.msrb.mxu0 %v157_v35  ;;  %v148_v41 = vld [vmem:[#allocation4 + $0xc0] sm:$0xff]  ;;  %335 = vmatpush.msrb.mxu1 %v221_v36  ;;  %v213_v44 = vld [vmem:[#allocation4 + $0x2c8] sm:$0xff]  ;;  %v170_v21 = vld [vmem:[#allocation4 + $0x170] sm:$0xff] }
  0x21   :  { %276 = vmatpush.msra.mxu2 %v152_v37  ;;  %v212_v42 = vld [vmem:[#allocation4 + $0x2c0] sm:$0xff]  ;;  %296 = vmatpush.msra.mxu3 %v216_v38  ;;  %v145_v47 = vld [vmem:[#allocation4 + $0xa8] sm:$0xff]  ;;  %v234_v22 = vld [vmem:[#allocation4 + $0x370] sm:$0xff] }
  0x22   :  { %316 = vmatpush.msrb.mxu0 %v153_v39  ;;  %v144_v45 = vld [vmem:[#allocation4 + $0xa0] sm:$0xff]  ;;  %336 = vmatpush.msrb.mxu1 %v217_v40  ;;  %v209_v48 = vld [vmem:[#allocation4 + $0x2a8] sm:$0xff]  ;;  %v171_v23 = vld [vmem:[#allocation4 + $0x178] sm:$0xff] }
  0x23   :  { %277 = vmatpush.msra.mxu2 %v148_v41  ;;  %v208_v46 = vld [vmem:[#allocation4 + $0x2a0] sm:$0xff]  ;;  %297 = vmatpush.msra.mxu3 %v212_v42  ;;  %v141_v51 = vld [vmem:[#allocation4 + $0x88] sm:$0xff]  ;;  %v235_v24 = vld [vmem:[#allocation4 + $0x378] sm:$0xff] }
  0x24   :  { %317 = vmatpush.msrb.mxu0 %v149_v43  ;;  %v140_v49 = vld [vmem:[#allocation4 + $0x80] sm:$0xff]  ;;  %337 = vmatpush.msrb.mxu1 %v213_v44  ;;  %v205_v52 = vld [vmem:[#allocation4 + $0x288] sm:$0xff]  ;;  %v166_v25 = vld [vmem:[#allocation4 + $0x150] sm:$0xff] }
  0x25   :  { %278 = vmatpush.msra.mxu2 %v144_v45  ;;  %v204_v50 = vld [vmem:[#allocation4 + $0x280] sm:$0xff]  ;;  %298 = vmatpush.msra.mxu3 %v208_v46  ;;  %v137_v55 = vld [vmem:[#allocation4 + $0x68] sm:$0xff]  ;;  %v230_v26 = vld [vmem:[#allocation4 + $0x350] sm:$0xff] }
  0x26   :  { %318 = vmatpush.msrb.mxu0 %v145_v47  ;;  %v136_v53 = vld [vmem:[#allocation4 + $0x60] sm:$0xff]  ;;  %338 = vmatpush.msrb.mxu1 %v209_v48  ;;  %v201_v56 = vld [vmem:[#allocation4 + $0x268] sm:$0xff]  ;;  %v167_v27 = vld [vmem:[#allocation4 + $0x158] sm:$0xff] }
  0x27   :  { %279 = vmatpush.msra.mxu2 %v140_v49  ;;  %v200_v54 = vld [vmem:[#allocation4 + $0x260] sm:$0xff]  ;;  %299 = vmatpush.msra.mxu3 %v204_v50  ;;  %v133_v59 = vld [vmem:[#allocation4 + $0x48] sm:$0xff]  ;;  %v231_v28 = vld [vmem:[#allocation4 + $0x358] sm:$0xff] }
  0x28   :  { %319 = vmatpush.msrb.mxu0 %v141_v51  ;;  %v132_v57 = vld [vmem:[#allocation4 + $0x40] sm:$0xff]  ;;  %339 = vmatpush.msrb.mxu1 %v205_v52  ;;  %v197_v60 = vld [vmem:[#allocation4 + $0x248] sm:$0xff]  ;;  %v162_v29 = vld [vmem:[#allocation4 + $0x130] sm:$0xff] }
  0x29   :  { %280 = vmatpush.msra.mxu2 %v136_v53  ;;  %v196_v58 = vld [vmem:[#allocation4 + $0x240] sm:$0xff]  ;;  %300 = vmatpush.msra.mxu3 %v200_v54  ;;  %v129_v63 = vld [vmem:[#allocation4 + $0x28] sm:$0xff]  ;;  %v226_v30 = vld [vmem:[#allocation4 + $0x330] sm:$0xff] }
  0x2a   :  { %320 = vmatpush.msrb.mxu0 %v137_v55  ;;  %v128_v61 = vld [vmem:[#allocation4 + $0x20] sm:$0xff]  ;;  %340 = vmatpush.msrb.mxu1 %v201_v56  ;;  %v193_v0 = vld [vmem:[#allocation4 + $0x228] sm:$0xff]  ;;  %v163_v31 = vld [vmem:[#allocation4 + $0x138] sm:$0xff] }
  0x2b   :  { %281 = vmatpush.msra.mxu2 %v132_v57  ;;  %v192_v62 = vld [vmem:[#allocation4 + $0x220] sm:$0xff]  ;;  %301 = vmatpush.msra.mxu3 %v196_v58  ;;  %v125_v3 = vld [vmem:[#allocation4 + $0x8] sm:$0xff]  ;;  %v227_v32 = vld [vmem:[#allocation4 + $0x338] sm:$0xff] }
  0x2c   :  { %321 = vmatpush.msrb.mxu0 %v133_v59  ;;  %v124_v1 = vld [vmem:[#allocation4] sm:$0xff]  ;;  %341 = vmatpush.msrb.mxu1 %v197_v60  ;;  %v189_v4 = vld [vmem:[#allocation4 + $0x208] sm:$0xff]  ;;  %v158_v33 = vld [vmem:[#allocation4 + $0x110] sm:$0xff] }
  0x2d   :  { %282 = vmatpush.msra.mxu2 %v128_v61  ;;  %v188_v2 = vld [vmem:[#allocation4 + $0x200] sm:$0xff]  ;;  %302 = vmatpush.msra.mxu3 %v192_v62  ;;  %v222_v34 = vld [vmem:[#allocation4 + $0x310] sm:$0xff]  ;;  %v159_v35 = vld [vmem:[#allocation4 + $0x118] sm:$0xff] }
  0x2e   :  { %322 = vmatpush.msrb.mxu0 %v129_v63  ;;  %342 = vmatpush.msrb.mxu1 %v193_v0  ;;  %v223_v36 = vld [vmem:[#allocation4 + $0x318] sm:$0xff]  ;;  %v154_v37 = vld [vmem:[#allocation4 + $0xf0] sm:$0xff] }
  0x2f   :  { %283 = vmatpush.msra.mxu2 %v124_v1  ;;  %303 = vmatpush.msra.mxu3 %v188_v2  ;;  %v218_v38 = vld [vmem:[#allocation4 + $0x2f0] sm:$0xff]  ;;  %v155_v39 = vld [vmem:[#allocation4 + $0xf8] sm:$0xff] }
  0x30   :  { %323 = vmatpush.msrb.mxu0 %v125_v3  ;;  %343 = vmatpush.msrb.mxu1 %v189_v4  ;;  %v219_v40 = vld [vmem:[#allocation4 + $0x2f8] sm:$0xff]  ;;  %v150_v41 = vld [vmem:[#allocation4 + $0xd0] sm:$0xff] }
  0x31   :  { %348 = vmatpush.msrb.mxu2 %v186_v5  ;;  %368 = vmatpush.msrb.mxu3 %v250_v6  ;;  %v214_v42 = vld [vmem:[#allocation4 + $0x2d0] sm:$0xff]  ;;  %v151_v43 = vld [vmem:[#allocation4 + $0xd8] sm:$0xff] }
  0x32   :  { %388 = vmatpush.msra.mxu0 %v187_v7  ;;  %408 = vmatpush.msra.mxu1 %v251_v8  ;;  %v215_v44 = vld [vmem:[#allocation4 + $0x2d8] sm:$0xff]  ;;  %v146_v45 = vld [vmem:[#allocation4 + $0xb0] sm:$0xff] }
  0x33   :  { %349 = vmatpush.msrb.mxu2 %v182_v9  ;;  %369 = vmatpush.msrb.mxu3 %v246_v10  ;;  %v210_v46 = vld [vmem:[#allocation4 + $0x2b0] sm:$0xff]  ;;  %v147_v47 = vld [vmem:[#allocation4 + $0xb8] sm:$0xff] }
  0x34   :  { %389 = vmatpush.msra.mxu0 %v183_v11  ;;  %409 = vmatpush.msra.mxu1 %v247_v12  ;;  %v211_v48 = vld [vmem:[#allocation4 + $0x2b8] sm:$0xff]  ;;  %v142_v49 = vld [vmem:[#allocation4 + $0x90] sm:$0xff] }
  0x35   :  { %350 = vmatpush.msrb.mxu2 %v178_v13  ;;  %370 = vmatpush.msrb.mxu3 %v242_v14  ;;  %v206_v50 = vld [vmem:[#allocation4 + $0x290] sm:$0xff]  ;;  %v143_v51 = vld [vmem:[#allocation4 + $0x98] sm:$0xff] }
  0x36   :  { %390 = vmatpush.msra.mxu0 %v179_v15  ;;  %410 = vmatpush.msra.mxu1 %v243_v16  ;;  %v207_v52 = vld [vmem:[#allocation4 + $0x298] sm:$0xff]  ;;  %v138_v53 = vld [vmem:[#allocation4 + $0x70] sm:$0xff] }
  0x37   :  { %351 = vmatpush.msrb.mxu2 %v174_v17  ;;  %371 = vmatpush.msrb.mxu3 %v238_v18  ;;  %v202_v54 = vld [vmem:[#allocation4 + $0x270] sm:$0xff]  ;;  %v139_v55 = vld [vmem:[#allocation4 + $0x78] sm:$0xff] }
  0x38   :  { %391 = vmatpush.msra.mxu0 %v175_v19  ;;  %411 = vmatpush.msra.mxu1 %v239_v20  ;;  %v203_v56 = vld [vmem:[#allocation4 + $0x278] sm:$0xff]  ;;  %v134_v57 = vld [vmem:[#allocation4 + $0x50] sm:$0xff] }
  0x39   :  { %352 = vmatpush.msrb.mxu2 %v170_v21  ;;  %372 = vmatpush.msrb.mxu3 %v234_v22  ;;  %v198_v58 = vld [vmem:[#allocation4 + $0x250] sm:$0xff]  ;;  %v135_v59 = vld [vmem:[#allocation4 + $0x58] sm:$0xff] }
  0x3a   :  { %392 = vmatpush.msra.mxu0 %v171_v23  ;;  %412 = vmatpush.msra.mxu1 %v235_v24  ;;  %v199_v60 = vld [vmem:[#allocation4 + $0x258] sm:$0xff]  ;;  %v130_v61 = vld [vmem:[#allocation4 + $0x30] sm:$0xff]  ;;  %v459_v24 = vld [vmem:[#allocation7 + $0x68] sm:$0xff] }
  0x3b   :  { %353 = vmatpush.msrb.mxu2 %v166_v25  ;;  %373 = vmatpush.msrb.mxu3 %v230_v26  ;;  %v194_v62 = vld [vmem:[#allocation4 + $0x230] sm:$0xff]  ;;  %v131_v63 = vld [vmem:[#allocation4 + $0x38] sm:$0xff]  ;;  %v475_v25 = vld [vmem:[#allocation7 + $0xe8] sm:$0xff] }
  0x3c   :  { %393 = vmatpush.msra.mxu0 %v167_v27  ;;  %413 = vmatpush.msra.mxu1 %v231_v28  ;;  %v195_v0 = vld [vmem:[#allocation4 + $0x238] sm:$0xff]  ;;  %v126_v1 = vld [vmem:[#allocation4 + $0x10] sm:$0xff]  ;;  %v458_v26 = vld [vmem:[#allocation7 + $0x60] sm:$0xff] }
  0x3d   :  { %354 = vmatpush.msrb.mxu2 %v162_v29  ;;  %374 = vmatpush.msrb.mxu3 %v226_v30  ;;  %v190_v2 = vld [vmem:[#allocation4 + $0x210] sm:$0xff]  ;;  %v127_v3 = vld [vmem:[#allocation4 + $0x18] sm:$0xff]  ;;  %v474_v27 = vld [vmem:[#allocation7 + $0xe0] sm:$0xff] }
  0x3e   :  { %394 = vmatpush.msra.mxu0 %v163_v31  ;;  %414 = vmatpush.msra.mxu1 %v227_v32  ;;  %v191_v4 = vld [vmem:[#allocation4 + $0x218] sm:$0xff]  ;;  %v460_v22 = vld [vmem:[#allocation7 + $0x70] sm:$0xff] }
  0x3f   :  { %355 = vmatpush.msrb.mxu2 %v158_v33  ;;  %375 = vmatpush.msrb.mxu3 %v222_v34  ;;  %v64_v5 = vld [vmem:[%s799_s2] sm:$0x3]  ;;  %v476_v23 = vld [vmem:[#allocation7 + $0xf0] sm:$0xff]  ;;  %v455_v34 = vld [vmem:[#allocation7 + $0x48] sm:$0xff] }
  0x40   :  { %395 = vmatpush.msra.mxu0 %v159_v35  ;;  %415 = vmatpush.msra.mxu1 %v223_v36  ;;  %v67_v6 = vperm.slane %v64_v5, 1  ;;  %v66_v7 = vperm.slane %v64_v5, 0  ;;  %v461_v16 = vld [vmem:[#allocation7 + $0x78] sm:$0xff]  ;;  %v456_v30 = vld [vmem:[#allocation7 + $0x50] sm:$0xff]  ;;  %v471_v35 = vld [vmem:[#allocation7 + $0xc8] sm:$0xff] }
  0x41   :  { %356 = vmatpush.msrb.mxu2 %v154_v37  ;;  %376 = vmatpush.msrb.mxu3 %v218_v38  ;;  %v477_v17 = vld [vmem:[#allocation7 + $0xf8] sm:$0xff]  ;;  %v472_v31 = vld [vmem:[#allocation7 + $0xd0] sm:$0xff]  ;;  %v491_v36 = vld [vmem:[#allocation7 + $0x168] sm:$0xff] }
  0x42   :  { %396 = vmatpush.msra.mxu0 %v155_v39  ;;  %416 = vmatpush.msra.mxu1 %v219_v40  ;;  %v493_v20 = vld [vmem:[#allocation7 + $0x178] sm:$0xff]  ;;  %v492_v32 = vld [vmem:[#allocation7 + $0x170] sm:$0xff]  ;;  %v507_v37 = vld [vmem:[#allocation7 + $0x1e8] sm:$0xff] }
  0x43   :  { %357 = vmatpush.msrb.mxu2 %v150_v41  ;;  %377 = vmatpush.msrb.mxu3 %v214_v42  ;;  %v509_v21 = vld [vmem:[#allocation7 + $0x1f8] sm:$0xff]  ;;  %v508_v33 = vld [vmem:[#allocation7 + $0x1f0] sm:$0xff]  ;;  %v454_v38 = vld [vmem:[#allocation7 + $0x40] sm:$0xff] }
  0x44   :  { %397 = vmatpush.msra.mxu0 %v151_v43  ;;  %417 = vmatpush.msra.mxu1 %v215_v44  ;;  %v457_v28 = vld [vmem:[#allocation7 + $0x58] sm:$0xff]  ;;  %v470_v39 = vld [vmem:[#allocation7 + $0xc0] sm:$0xff]  ;;  %v499_v5 = vld [vmem:[#allocation7 + $0x1a8] sm:$0xff] }
  0x45   :  { %358 = vmatpush.msrb.mxu2 %v146_v45  ;;  %378 = vmatpush.msrb.mxu3 %v210_v46  ;;  %v473_v29 = vld [vmem:[#allocation7 + $0xd8] sm:$0xff]  ;;  %v490_v40 = vld [vmem:[#allocation7 + $0x160] sm:$0xff]  ;;  %v452_v46 = vld [vmem:[#allocation7 + $0x30] sm:$0xff] }
  0x46   :  { %398 = vmatpush.msra.mxu0 %v147_v47  ;;  %418 = vmatpush.msra.mxu1 %v211_v48  ;;  %v506_v41 = vld [vmem:[#allocation7 + $0x1e0] sm:$0xff]  ;;  %v453_v42 = vld [vmem:[#allocation7 + $0x38] sm:$0xff]  ;;  %v468_v47 = vld [vmem:[#allocation7 + $0xb0] sm:$0xff] }
  0x47   :  { %359 = vmatpush.msrb.mxu2 %v142_v49  ;;  %379 = vmatpush.msrb.mxu3 %v206_v50  ;;  %v469_v43 = vld [vmem:[#allocation7 + $0xb8] sm:$0xff]  ;;  %v488_v48 = vld [vmem:[#allocation7 + $0x150] sm:$0xff]  ;;  %v451_v50 = vld [vmem:[#allocation7 + $0x28] sm:$0xff] }
  0x48   :  { %399 = vmatpush.msra.mxu0 %v143_v51  ;;  %419 = vmatpush.msra.mxu1 %v207_v52  ;;  %v489_v44 = vld [vmem:[#allocation7 + $0x158] sm:$0xff]  ;;  %v504_v49 = vld [vmem:[#allocation7 + $0x1d0] sm:$0xff]  ;;  %v467_v51 = vld [vmem:[#allocation7 + $0xa8] sm:$0xff] }
  0x49   :  { %360 = vmatpush.msrb.mxu2 %v138_v53  ;;  %380 = vmatpush.msrb.mxu3 %v202_v54  ;;  %v505_v45 = vld [vmem:[#allocation7 + $0x1d8] sm:$0xff]  ;;  %v487_v52 = vld [vmem:[#allocation7 + $0x148] sm:$0xff]  ;;  %v450_v54 = vld [vmem:[#allocation7 + $0x20] sm:$0xff] }
  0x4a   :  { %400 = vmatpush.msra.mxu0 %v139_v55  ;;  %420 = vmatpush.msra.mxu1 %v203_v56  ;;  %v503_v53 = vld [vmem:[#allocation7 + $0x1c8] sm:$0xff]  ;;  %v466_v55 = vld [vmem:[#allocation7 + $0xa0] sm:$0xff] }
  0x4b   :  { %361 = vmatpush.msrb.mxu2 %v134_v57  ;;  %381 = vmatpush.msrb.mxu3 %v198_v58  ;;  %v486_v56 = vld [vmem:[#allocation7 + $0x140] sm:$0xff]  ;;  %v449_v58 = vld [vmem:[#allocation7 + $0x18] sm:$0xff] }
  0x4c   :  { %401 = vmatpush.msra.mxu0 %v135_v59  ;;  %421 = vmatpush.msra.mxu1 %v199_v60  ;;  %v502_v57 = vld [vmem:[#allocation7 + $0x1c0] sm:$0xff]  ;;  %v465_v59 = vld [vmem:[#allocation7 + $0x98] sm:$0xff] }
  0x4d   :  { %362 = vmatpush.msrb.mxu2 %v130_v61  ;;  %382 = vmatpush.msrb.mxu3 %v194_v62  ;;  %v485_v60 = vld [vmem:[#allocation7 + $0x138] sm:$0xff]  ;;  %v448_v62 = vld [vmem:[#allocation7 + $0x10] sm:$0xff] }
  0x4e   :  { %402 = vmatpush.msra.mxu0 %v131_v63  ;;  %422 = vmatpush.msra.mxu1 %v195_v0  ;;  %v501_v61 = vld [vmem:[#allocation7 + $0x1b8] sm:$0xff]  ;;  %v464_v63 = vld [vmem:[#allocation7 + $0x90] sm:$0xff] }
  0x4f   :  { %363 = vmatpush.msrb.mxu2 %v126_v1  ;;  %383 = vmatpush.msrb.mxu3 %v190_v2  ;;  %v484_v0 = vld [vmem:[#allocation7 + $0x130] sm:$0xff]  ;;  %v447_v2 = vld [vmem:[#allocation7 + $0x8] sm:$0xff] }
  0x50   :  { %403 = vmatpush.msra.mxu0 %v127_v3  ;;  %423 = vmatpush.msra.mxu1 %v191_v4  ;;  %v500_v1 = vld [vmem:[#allocation7 + $0x1b0] sm:$0xff]  ;;  %v463_v3 = vld [vmem:[#allocation7 + $0x88] sm:$0xff] }
  0x51   :  { %v483_v4 = vld [vmem:[#allocation7 + $0x128] sm:$0xff] }
  0x8d   :  { %v111_v8 = vpop.f32.mrf.mxu1 }
  0x8e   :  { %v91_v9 = vpop.f32.mrf.mxu0  ;;  %v112_v10 = vadd.f32 %v111_v8, %v67_v6  ;;  %v446_v6 = vld [vmem:[#allocation7] sm:$0xff] }
  0x8f   :  { %v92_v11 = vadd.f32 %v91_v9, %v66_v7  ;;  %v462_v7 = vld [vmem:[#allocation7 + $0x80] sm:$0xff] }
  0x90   :  { %v115_v12 = vmax.f32 %v112_v10, 0.0  ;;  %v482_v8 = vld [vmem:[#allocation7 + $0x120] sm:$0xff]  ;;  %v481_v10 = vld [vmem:[#allocation7 + $0x118] sm:$0xff] }
  0x91   :  { %v114_v13 = vmax.f32 %v92_v11, 0.0  ;;  %v498_v9 = vld [vmem:[#allocation7 + $0x1a0] sm:$0xff]  ;;  %v497_v11 = vld [vmem:[#allocation7 + $0x198] sm:$0xff] }
  0x92   :  { %v118_v14 = vrot.slane %v115_v12, 4  ;;  %v480_v12 = vld [vmem:[#allocation7 + $0x110] sm:$0xff] }
  0x94   :  { %v120_v15 = vsel %vm119_vm1, %v114_v13, %v118_v14  ;;  %v496_v13 = vld [vmem:[#allocation7 + $0x190] sm:$0xff]  ;;  %v479_v14 = vld [vmem:[#allocation7 + $0x108] sm:$0xff] }
  0x95   :  { %263 = vst [vmem:[#allocation1] ss:$2 sm:$0xff] %v120_v15  ;;  %v495_v15 = vld [vmem:[#allocation7 + $0x188] sm:$0xff] }
  0x9c   :  { %v264_v18 = vld.sshfl [vmem:[#allocation1] sm:$0xff pattern:$0x75316420]  ;;  %v265_v19 = vld.sshfl [vmem:[#allocation1 + $0x8] sm:$0xff pattern:$0x75316420] }
  0x9d   :  { %284 = vmatmul.f32.vlgmr.msra.gmra.mxu2 %v264_v18  ;;  %304 = vmatmul.f32.vlgmr.msra.gmra.mxu3 %v265_v19 }
  0x9e   :  { %324 = vmatmul.f32.vlgmr.msrb.gmra.mxu0 %v264_v18  ;;  %344 = vmatmul.f32.vlgmr.msrb.gmra.mxu1 %v265_v19 }
  0x9f   :  { %527 = vmatpush.msra.mxu2 %v461_v16  ;;  %547 = vmatpush.msra.mxu3 %v477_v17  ;;  %v252_v16 = vld [vmem:[%s801_s4] sm:$0xf]  ;;  %v478_v17 = vld [vmem:[#allocation7 + $0x100] sm:$0xff] }
  0xa0   :  { %567 = vmatpush.msrb.mxu0 %v493_v20  ;;  %587 = vmatpush.msrb.mxu1 %v509_v21 }
  0xa1   :  { %528 = vmatpush.msra.mxu2 %v460_v22  ;;  %548 = vmatpush.msra.mxu3 %v476_v23  ;;  %v254_v23 = vperm.slane %v252_v16, 0 }
  0xa2   :  { %568 = vmatpush.msrb.mxu0 %v492_v32  ;;  %588 = vmatpush.msrb.mxu1 %v508_v33 }
  0xa3   :  { %529 = vmatpush.msra.mxu2 %v459_v24  ;;  %549 = vmatpush.msra.mxu3 %v475_v25 }
  0xa4   :  { %569 = vmatpush.msrb.mxu0 %v491_v36  ;;  %589 = vmatpush.msrb.mxu1 %v507_v37  ;;  %v256_v36 = vperm.slane %v252_v16, 2 }
  0xa5   :  { %364 = vmatmul.f32.vlgmr.msrb.gmra.mxu2 %v264_v18  ;;  %384 = vmatmul.f32.vlgmr.msrb.gmra.mxu3 %v265_v19 }
  0xa6   :  { %404 = vmatmul.f32.vlgmr.msra.gmra.mxu0 %v264_v18  ;;  %424 = vmatmul.f32.vlgmr.msra.gmra.mxu1 %v265_v19  ;;  %v494_v18 = vld [vmem:[#allocation7 + $0x180] sm:$0xff]  ;;  %v255_v19 = vperm.slane %v252_v16, 1 }
  0xa7   :  { %530 = vmatpush.msra.mxu2 %v458_v26  ;;  %550 = vmatpush.msra.mxu3 %v474_v27  ;;  %v257_v27 = vperm.slane %v252_v16, 3 }
  0xa8   :  { %570 = vmatpush.msrb.mxu0 %v490_v40  ;;  %590 = vmatpush.msrb.mxu1 %v506_v41 }
  0xa9   :  { %531 = vmatpush.msra.mxu2 %v457_v28  ;;  %551 = vmatpush.msra.mxu3 %v473_v29 }
  0xaa   :  { %571 = vmatpush.msrb.mxu0 %v489_v44  ;;  %591 = vmatpush.msrb.mxu1 %v505_v45 }
  0xab   :  { %532 = vmatpush.msra.mxu2 %v456_v30  ;;  %552 = vmatpush.msra.mxu3 %v472_v31 }
  0xac   :  { %572 = vmatpush.msrb.mxu0 %v488_v48  ;;  %592 = vmatpush.msrb.mxu1 %v504_v49 }
  0xad   :  { %533 = vmatpush.msra.mxu2 %v455_v34  ;;  %553 = vmatpush.msra.mxu3 %v471_v35 }
  0xae   :  { %573 = vmatpush.msrb.mxu0 %v487_v52  ;;  %593 = vmatpush.msrb.mxu1 %v503_v53 }
  0xaf   :  { %534 = vmatpush.msra.mxu2 %v454_v38  ;;  %554 = vmatpush.msra.mxu3 %v470_v39 }
  0xb0   :  { %574 = vmatpush.msrb.mxu0 %v486_v56  ;;  %594 = vmatpush.msrb.mxu1 %v502_v57 }
  0xb1   :  { %535 = vmatpush.msra.mxu2 %v453_v42  ;;  %555 = vmatpush.msra.mxu3 %v469_v43 }
  0xb2   :  { %575 = vmatpush.msrb.mxu0 %v485_v60  ;;  %595 = vmatpush.msrb.mxu1 %v501_v61 }
  0xb3   :  { %536 = vmatpush.msra.mxu2 %v452_v46  ;;  %556 = vmatpush.msra.mxu3 %v468_v47 }
  0xb4   :  { %576 = vmatpush.msrb.mxu0 %v484_v0  ;;  %596 = vmatpush.msrb.mxu1 %v500_v1 }
  0xb5   :  { %537 = vmatpush.msra.mxu2 %v451_v50  ;;  %557 = vmatpush.msra.mxu3 %v467_v51  ;;  %v635_v51 = vld [vmem:[%s803_s6] ss:$0 sm:$0xff] }
  0xb6   :  { %577 = vmatpush.msrb.mxu0 %v483_v4  ;;  %597 = vmatpush.msrb.mxu1 %v499_v5 }
  0xb7   :  { %538 = vmatpush.msra.mxu2 %v450_v54  ;;  %558 = vmatpush.msra.mxu3 %v466_v55 }
  0xb8   :  { %578 = vmatpush.msrb.mxu0 %v482_v8  ;;  %598 = vmatpush.msrb.mxu1 %v498_v9 }
  0xb9   :  { %539 = vmatpush.msra.mxu2 %v449_v58  ;;  %559 = vmatpush.msra.mxu3 %v465_v59 }
  0xba   :  { %579 = vmatpush.msrb.mxu0 %v481_v10  ;;  %599 = vmatpush.msrb.mxu1 %v497_v11 }
  0xbb   :  { %540 = vmatpush.msra.mxu2 %v448_v62  ;;  %560 = vmatpush.msra.mxu3 %v464_v63 }
  0xbc   :  { %580 = vmatpush.msrb.mxu0 %v480_v12  ;;  %600 = vmatpush.msrb.mxu1 %v496_v13 }
  0xbd   :  { %541 = vmatpush.msra.mxu2 %v447_v2  ;;  %561 = vmatpush.msra.mxu3 %v463_v3 }
  0xbe   :  { %581 = vmatpush.msrb.mxu0 %v479_v14  ;;  %601 = vmatpush.msrb.mxu1 %v495_v15 }
  0xbf   :  { %542 = vmatpush.msra.mxu2 %v446_v6  ;;  %562 = vmatpush.msra.mxu3 %v462_v7 }
  0xc0   :  { %582 = vmatpush.msrb.mxu0 %v478_v17  ;;  %602 = vmatpush.msrb.mxu1 %v494_v18 }
 0x11b   :  { %v325_v20 = vpop.f32.mrf.mxu0  ;;  %v345_v21 = vpop.f32.mrf.mxu1 }
 0x11c   :  { %v326_v22 = vadd.f32 %v325_v20, %v255_v19 }
 0x11e   :  { %v346_v24 = vadd.f32 %v345_v21, %v326_v22 }
 0x120   :  { %v285_v25 = vpop.f32.mrf.mxu2  ;;  %v305_v26 = vpop.f32.mrf.mxu3  ;;  %v429_v28 = vmax.f32 %v346_v24, 0.0 }
 0x121   :  { %v286_v29 = vadd.f32 %v285_v25, %v254_v23 }
 0x122   :  { %v436_v33 = vrot.slane %v429_v28, 4 }
 0x123   :  { %v306_v30 = vadd.f32 %v305_v26, %v286_v29  ;;  %v405_v31 = vpop.f32.mrf.mxu0  ;;  %v425_v35 = vpop.f32.mrf.mxu1 }
 0x124   :  { %v406_v32 = vadd.f32 %v405_v31, %v257_v27 }
 0x125   :  { %v428_v34 = vmax.f32 %v306_v30, 0.0 }
 0x126   :  { %v426_v37 = vadd.f32 %v425_v35, %v406_v32 }
 0x127   :  { %v438_v38 = vsel %vm119_vm1, %v428_v34, %v436_v33 }
 0x128   :  { %516 = vst [vmem:[#allocation1] ss:$2 sm:$0xff] %v438_v38  ;;  %v365_v39 = vpop.f32.mrf.mxu2  ;;  %v431_v40 = vmax.f32 %v426_v37, 0.0  ;;  %v385_v42 = vpop.f32.mrf.mxu3 }
 0x129   :  { %v366_v41 = vadd.f32 %v365_v39, %v256_v36 }
 0x12a   :  { %v437_v44 = vrot.slane %v431_v40, 4 }
 0x12b   :  { %v386_v43 = vadd.f32 %v385_v42, %v366_v41 }
 0x12d   :  { %v430_v45 = vmax.f32 %v386_v43, 0.0 }
 0x12f   :  { %v439_v46 = vsel %vm119_vm1, %v430_v45, %v437_v44  ;;  %v519_v47 = vld.sshfl [vmem:[#allocation1] sm:$0xff pattern:$0x75316420]  ;;  %v520_v48 = vld.sshfl [vmem:[#allocation1 + $0x8] sm:$0xff pattern:$0x75316420] }
 0x130   :  { %518 = vst [vmem:[#allocation1 + $0x10] ss:$2 sm:$0xff] %v439_v46  ;;  %543 = vmatmul.f32.vlgmr.msra.gmra.mxu2 %v519_v47  ;;  %563 = vmatmul.f32.vlgmr.msra.gmra.mxu3 %v520_v48 }
 0x137   :  { %v521_v49 = vld.sshfl [vmem:[#allocation1 + $0x10] sm:$0xff pattern:$0x75316420]  ;;  %v522_v50 = vld.sshfl [vmem:[#allocation1 + $0x18] sm:$0xff pattern:$0x75316420] }
 0x138   :  { %583 = vmatmul.f32.vlgmr.msrb.gmra.mxu0 %v521_v49  ;;  %603 = vmatmul.f32.vlgmr.msrb.gmra.mxu1 %v522_v50 }
 0x1b3   :  { %v544_v52 = vpop.f32.mrf.mxu2  ;;  %v564_v54 = vpop.f32.mrf.mxu3 }
 0x1b4   :  { %v545_v53 = vadd.f32 %v635_v51, %v544_v52 }
 0x1b5   :  { %v584_v56 = vpop.f32.mrf.mxu0  ;;  %v604_v58 = vpop.f32.mrf.mxu1 }
 0x1b6   :  { %v565_v55 = vadd.f32 %v564_v54, %v545_v53 }
 0x1b8   :  { %v585_v57 = vadd.f32 %v584_v56, %v565_v55 }
 0x1ba   :  { %v605_v59 = vadd.f32 %v604_v58, %v585_v57 }
 0x1bc   :  { %607 = vst [vmem:[#allocation9] sm:$0xf] %v605_v59 }
 0x1bd   :  { %618 = dma.vmem_to_hbm [thread:$0]  %s614_s26, 64, %s616_s29, [#allocation6]  }
 0x1be   :  { %712 = dma.done.wait [#allocation6], 64  }
 0x1bf   :  { %713 = vsyncadd [#allocation6], 4294967232 }
 0x1c0   :  { %623 = vsyncpa [#allocation5], 1 }
 0x1c1   :  { %624 = vsyncpa [#allocation8], 1 }
 0x1c2   :  { %625 = vsyncpa [#allocation6], 1 }

</bundles_post_ra>
